<compile_context>
chip_gen: v6e
topology: v6e:2x2x1
jax: 0.10.0
libtpu: 0.0.40
codegen_flags: <defaults>
</compile_context>

<pallas_src>
import jax
import jax.numpy as jnp
from jax import lax
from jax.experimental import pallas as pl
from jax.experimental.pallas import tpu as pltpu


def model_kernel(nid_ref, edge_ref, emb_ref,
                 w1l_ref, w1r_ref, b1_ref,
                 w2l_ref, w2r_ref, b2_ref,
                 pred_ref):
    """Whole forward pass on full (small) arrays resident in VMEM.

    SAGEConv (PyG default, mean aggr):
        out[i] = mean_{j in N(i)} x[j] @ W_l^T + b_l  +  x[i] @ W_r^T
    """
    f32 = jnp.float32
    N = nid_ref.shape[0]
    n_tbl = emb_ref.shape[0]
    E = edge_ref.shape[0] // 2   # edge_ref = [src_0..src_{E-1}, dst_0..dst_{E-1}] as (2E, 1)

    # ---- edge selection one-hots built in-kernel (no host-side one_hot / scatter) ----
    ecol = lax.broadcasted_iota(jnp.int32, (2 * E, N), 1)
    sel = (ecol == edge_ref[...]).astype(f32)            # (2E, N); rows <E: src, rows >=E: dst
    s_mat = sel[:E]                                      # (E, N)
    d_mat = sel[E:]                                      # (E, N)

    # Normalized mean-aggregation adjacency A[i, j] = #(edges j->i) / deg_in(i),
    # built as (D / deg)^T @ S in one small MXU contraction (normalization folded
    # into D so no (N, 1) column / transpose is ever needed).
    deg = jnp.sum(d_mat, axis=0, keepdims=True)          # (1, N) in-degree
    d_norm = d_mat / jnp.maximum(deg, 1.0)               # (E, N)
    a = lax.dot_general(d_norm, s_mat, (((0,), (0,)), ((), ())),
                        preferred_element_type=f32)      # (N, N)

    # ---- embedding lookup as a one-hot matmul ----
    tcol = lax.broadcasted_iota(jnp.int32, (N, n_tbl), 1)
    p = (tcol == nid_ref[...]).astype(f32)               # (N, n_tbl)
    x0 = jnp.dot(p, emb_ref[...], preferred_element_type=f32)   # (N, H)

    # ---- fused SAGEConv: [agg, x] @ [Wl | Wr]^T + b in a single MXU contraction ----
    def sage(x_in, wl, wr, b):
        agg = jnp.dot(a, x_in, preferred_element_type=f32)       # (N, H)
        z = jnp.concatenate([agg, x_in], axis=-1)                # (N, 2H)
        wcat = jnp.concatenate([wl, wr], axis=-1)                # (H, 2H)
        return lax.dot_general(z, wcat, (((1,), (1,)), ((), ())),
                               preferred_element_type=f32) + b   # (N, H)

    h1 = jnp.maximum(sage(x0, w1l_ref[...], w1r_ref[...], b1_ref[...]), 0.0)
    h2 = sage(h1, w2l_ref[...], w2r_ref[...], b2_ref[...])

    # ---- classifier: one fused gather matmul, then per-edge dot product ----
    gathered = jnp.dot(sel, h2, preferred_element_type=f32)      # (2E, H)
    src_feat = gathered[:E]                                      # (E, H)
    dst_feat = gathered[E:]                                      # (E, H)
    m = lax.dot_general(src_feat, dst_feat, (((1,), (1,)), ((), ())),
                        preferred_element_type=f32)              # (E, E)
    eye = (lax.broadcasted_iota(jnp.int32, (E, E), 0)
           == lax.broadcasted_iota(jnp.int32, (E, E), 1)).astype(f32)
    # Lane-dense (1, E) output row: pred[e] = m[e, e].
    pred_ref[...] = jnp.sum(m * eye, axis=0, keepdims=True)


@jax.jit
def model_forward(node_id, edge_index, emb_table,
                  w1l, w1r, b1, w2l, w2r, b2):
    """Thin wrapper: only reshapes/casts (metadata ops), then one pallas_call."""
    n_tbl, H = emb_table.shape
    N = node_id.shape[0]
    E = edge_index.shape[1]

    args = (
        node_id.reshape(N, 1).astype(jnp.int32),
        edge_index.reshape(2 * E, 1).astype(jnp.int32),   # row-major -> [src..., dst...]
        emb_table.astype(jnp.float32),
        w1l.astype(jnp.float32), w1r.astype(jnp.float32),
        b1.reshape(1, H).astype(jnp.float32),
        w2l.astype(jnp.float32), w2r.astype(jnp.float32),
        b2.reshape(1, H).astype(jnp.float32),
    )

    vmem = pl.BlockSpec(memory_space=pltpu.MemorySpace.VMEM)
    pred = pl.pallas_call(
        model_kernel,
        out_shape=jax.ShapeDtypeStruct((1, E), jnp.float32),
        in_specs=[vmem] * len(args),
        out_specs=vmem,
    )(*args)
    return pred.reshape(E)


def model_reference(node_id, edge_index, emb_table,
                    w1l, w1r, b1, w2l, w2r, b2):
    """Pure-JAX reference mirroring the PyTorch semantics."""
    N, H = emb_table.shape
    x = emb_table[node_id].astype(jnp.float32)
    src, dst = edge_index[0], edge_index[1]

    def sage(x, wl, wr, b):
        summed = jnp.zeros((N, H), jnp.float32).at[dst].add(x[src])
        cnt = jnp.zeros((N,), jnp.float32).at[dst].add(1.0)
        agg = summed / jnp.clip(cnt, 1.0, None)[:, None]
        return agg @ wl.T + b + x @ wr.T

    h1 = jax.nn.relu(sage(x, w1l, w1r, b1))
    h2 = sage(h1, w2l, w2r, b2)
    return jnp.sum(h2[src] * h2[dst], axis=-1)


if __name__ == "__main__":
    N = 16          # number of nodes (size of node_id / embedding table)
    H = 32          # hidden_channels
    E = 8           # number of edges

    key = jax.random.PRNGKey(0)
    k_emb, k_edge, k1, k2, k3, k4, k5, k6 = jax.random.split(key, 8)

    node_id = jnp.arange(N, dtype=jnp.int32)
    edge_index = jax.random.randint(k_edge, (2, E), 0, N, dtype=jnp.int32)

    emb_table = jax.random.normal(k_emb, (N, H), jnp.float32)

    scale = 1.0 / jnp.sqrt(H)
    w1l = jax.random.normal(k1, (H, H), jnp.float32) * scale
    w1r = jax.random.normal(k2, (H, H), jnp.float32) * scale
    b1 = jax.random.normal(k3, (H,), jnp.float32) * scale
    w2l = jax.random.normal(k4, (H, H), jnp.float32) * scale
    w2r = jax.random.normal(k5, (H, H), jnp.float32) * scale
    b2 = jax.random.normal(k6, (H,), jnp.float32) * scale

    pred = model_forward(node_id, edge_index, emb_table,
                         w1l, w1r, b1, w2l, w2r, b2)
    pred = jax.block_until_ready(pred)

    ref = model_reference(node_id, edge_index, emb_table,
                          w1l, w1r, b1, w2l, w2r, b2)
    ref = jax.block_until_ready(ref)

    assert pred.shape == (E,)
    assert jnp.allclose(pred, ref, atol=1e-3, rtol=1e-3), (pred, ref)
    print("KERNEL_OK")
</pallas_src>

<mosaic_0001>
module attributes {stable_mosaic.version = 11 : i64} {
  func.func @model_kernel(%arg0: memref<16x1xi32, #tpu.memory_space<vmem>>, %arg1: memref<16x1xi32, #tpu.memory_space<vmem>>, %arg2: memref<16x32xf32, #tpu.memory_space<vmem>>, %arg3: memref<32x32xf32, #tpu.memory_space<vmem>>, %arg4: memref<32x32xf32, #tpu.memory_space<vmem>>, %arg5: memref<1x32xf32, #tpu.memory_space<vmem>>, %arg6: memref<32x32xf32, #tpu.memory_space<vmem>>, %arg7: memref<32x32xf32, #tpu.memory_space<vmem>>, %arg8: memref<1x32xf32, #tpu.memory_space<vmem>>, %arg9: memref<1x8xf32, #tpu.memory_space<vmem>>) attributes {dimension_semantics = [], scalar_prefetch = 0 : i64, scratch_operands = 0 : i64, tpu.core_type = #tpu.core_type<tc>} {
    %0 = tpu.iota {dimensions = array<i32: 1>} : vector<16x16xi32>
    %c0 = arith.constant 0 : index
    %c0_0 = arith.constant 0 : index
    %1 = vector.load %arg1[%c0, %c0_0] : memref<16x1xi32, #tpu.memory_space<vmem>>, vector<16x1xi32>
    %2 = vector.broadcast %1 : vector<16x1xi32> to vector<16x16xi32>
    %3 = arith.cmpi eq, %0, %2 : vector<16x16xi32>
    %4 = arith.extui %3 : vector<16x16xi1> to vector<16x16xi32>
    %5 = arith.sitofp %4 : vector<16x16xi32> to vector<16x16xf32>
    %6 = vector.extract_strided_slice %5 {offsets = [0, 0], sizes = [8, 16], strides = [1, 1]} : vector<16x16xf32> to vector<8x16xf32>
    %7 = vector.extract_strided_slice %5 {offsets = [8, 0], sizes = [8, 16], strides = [1, 1]} : vector<16x16xf32> to vector<8x16xf32>
    %cst = arith.constant dense<0.000000e+00> : vector<16xf32>
    %8 = vector.multi_reduction <add>, %7, %cst [0] : vector<8x16xf32> to vector<16xf32>
    %9 = vector.shape_cast %8 : vector<16xf32> to vector<1x16xf32>
    %cst_1 = arith.constant 1.000000e+00 : f32
    %10 = vector.broadcast %cst_1 : f32 to vector<1x16xf32>
    %11 = arith.maximumf %9, %10 : vector<1x16xf32>
    %12 = vector.broadcast %11 : vector<1x16xf32> to vector<8x16xf32>
    %13 = arith.divf %7, %12 : vector<8x16xf32>
    %cst_2 = arith.constant dense<0.000000e+00> : vector<16x16xf32>
    %14 = tpu.matmul %13, %6, %cst_2 {dimension_numbers = #tpu.dot_dimension_numbers<[0], [0], [1], [1], [0, 1, 1, 1], [], []>} : vector<8x16xf32>, vector<8x16xf32>, vector<16x16xf32> -> vector<16x16xf32>
    %15 = tpu.iota {dimensions = array<i32: 1>} : vector<16x16xi32>
    %c0_3 = arith.constant 0 : index
    %c0_4 = arith.constant 0 : index
    %16 = vector.load %arg0[%c0_3, %c0_4] : memref<16x1xi32, #tpu.memory_space<vmem>>, vector<16x1xi32>
    %17 = vector.broadcast %16 : vector<16x1xi32> to vector<16x16xi32>
    %18 = arith.cmpi eq, %15, %17 : vector<16x16xi32>
    %19 = arith.extui %18 : vector<16x16xi1> to vector<16x16xi32>
    %20 = arith.sitofp %19 : vector<16x16xi32> to vector<16x16xf32>
    %c0_5 = arith.constant 0 : index
    %c0_6 = arith.constant 0 : index
    %21 = vector.load %arg2[%c0_5, %c0_6] : memref<16x32xf32, #tpu.memory_space<vmem>>, vector<16x32xf32>
    %cst_7 = arith.constant dense<0.000000e+00> : vector<16x32xf32>
    %22 = tpu.matmul %20, %21, %cst_7 {dimension_numbers = #tpu.dot_dimension_numbers<[1], [0], [0], [1], [0, 0, 1, 1], [], []>} : vector<16x16xf32>, vector<16x32xf32>, vector<16x32xf32> -> vector<16x32xf32>
    %c0_8 = arith.constant 0 : index
    %c0_9 = arith.constant 0 : index
    %23 = vector.load %arg3[%c0_8, %c0_9] : memref<32x32xf32, #tpu.memory_space<vmem>>, vector<32x32xf32>
    %c0_10 = arith.constant 0 : index
    %c0_11 = arith.constant 0 : index
    %24 = vector.load %arg4[%c0_10, %c0_11] : memref<32x32xf32, #tpu.memory_space<vmem>>, vector<32x32xf32>
    %c0_12 = arith.constant 0 : index
    %c0_13 = arith.constant 0 : index
    %25 = vector.load %arg5[%c0_12, %c0_13] : memref<1x32xf32, #tpu.memory_space<vmem>>, vector<1x32xf32>
    %cst_14 = arith.constant dense<0.000000e+00> : vector<16x32xf32>
    %26 = tpu.matmul %14, %22, %cst_14 {dimension_numbers = #tpu.dot_dimension_numbers<[1], [0], [0], [1], [0, 0, 1, 1], [], []>} : vector<16x16xf32>, vector<16x32xf32>, vector<16x32xf32> -> vector<16x32xf32>
    %27 = tpu.concatenate %26, %22 in 1 : vector<16x32xf32>, vector<16x32xf32> -> vector<16x64xf32>
    %28 = tpu.concatenate %23, %24 in 1 : vector<32x32xf32>, vector<32x32xf32> -> vector<32x64xf32>
    %cst_15 = arith.constant dense<0.000000e+00> : vector<16x32xf32>
    %29 = tpu.matmul %27, %28, %cst_15 {dimension_numbers = #tpu.dot_dimension_numbers<[1], [1], [0], [0], [0, 0, 1, 0], [], []>} : vector<16x64xf32>, vector<32x64xf32>, vector<16x32xf32> -> vector<16x32xf32>
    %30 = vector.broadcast %25 : vector<1x32xf32> to vector<16x32xf32>
    %31 = arith.addf %29, %30 : vector<16x32xf32>
    %cst_16 = arith.constant 0.000000e+00 : f32
    %32 = vector.broadcast %cst_16 : f32 to vector<16x32xf32>
    %33 = arith.maximumf %31, %32 : vector<16x32xf32>
    %c0_17 = arith.constant 0 : index
    %c0_18 = arith.constant 0 : index
    %34 = vector.load %arg6[%c0_17, %c0_18] : memref<32x32xf32, #tpu.memory_space<vmem>>, vector<32x32xf32>
    %c0_19 = arith.constant 0 : index
    %c0_20 = arith.constant 0 : index
    %35 = vector.load %arg7[%c0_19, %c0_20] : memref<32x32xf32, #tpu.memory_space<vmem>>, vector<32x32xf32>
    %c0_21 = arith.constant 0 : index
    %c0_22 = arith.constant 0 : index
    %36 = vector.load %arg8[%c0_21, %c0_22] : memref<1x32xf32, #tpu.memory_space<vmem>>, vector<1x32xf32>
    %cst_23 = arith.constant dense<0.000000e+00> : vector<16x32xf32>
    %37 = tpu.matmul %14, %33, %cst_23 {dimension_numbers = #tpu.dot_dimension_numbers<[1], [0], [0], [1], [0, 0, 1, 1], [], []>} : vector<16x16xf32>, vector<16x32xf32>, vector<16x32xf32> -> vector<16x32xf32>
    %38 = tpu.concatenate %37, %33 in 1 : vector<16x32xf32>, vector<16x32xf32> -> vector<16x64xf32>
    %39 = tpu.concatenate %34, %35 in 1 : vector<32x32xf32>, vector<32x32xf32> -> vector<32x64xf32>
    %cst_24 = arith.constant dense<0.000000e+00> : vector<16x32xf32>
    %40 = tpu.matmul %38, %39, %cst_24 {dimension_numbers = #tpu.dot_dimension_numbers<[1], [1], [0], [0], [0, 0, 1, 0], [], []>} : vector<16x64xf32>, vector<32x64xf32>, vector<16x32xf32> -> vector<16x32xf32>
    %41 = vector.broadcast %36 : vector<1x32xf32> to vector<16x32xf32>
    %42 = arith.addf %40, %41 : vector<16x32xf32>
    %cst_25 = arith.constant dense<0.000000e+00> : vector<16x32xf32>
    %43 = tpu.matmul %5, %42, %cst_25 {dimension_numbers = #tpu.dot_dimension_numbers<[1], [0], [0], [1], [0, 0, 1, 1], [], []>} : vector<16x16xf32>, vector<16x32xf32>, vector<16x32xf32> -> vector<16x32xf32>
    %44 = vector.extract_strided_slice %43 {offsets = [0, 0], sizes = [8, 32], strides = [1, 1]} : vector<16x32xf32> to vector<8x32xf32>
    %45 = vector.extract_strided_slice %43 {offsets = [8, 0], sizes = [8, 32], strides = [1, 1]} : vector<16x32xf32> to vector<8x32xf32>
    %cst_26 = arith.constant dense<0.000000e+00> : vector<8x8xf32>
    %46 = tpu.matmul %44, %45, %cst_26 {dimension_numbers = #tpu.dot_dimension_numbers<[1], [1], [0], [0], [0, 0, 1, 0], [], []>} : vector<8x32xf32>, vector<8x32xf32>, vector<8x8xf32> -> vector<8x8xf32>
    %47 = tpu.iota {dimensions = array<i32: 0>} : vector<8x8xi32>
    %48 = tpu.iota {dimensions = array<i32: 1>} : vector<8x8xi32>
    %49 = arith.cmpi eq, %47, %48 : vector<8x8xi32>
    %50 = arith.extui %49 : vector<8x8xi1> to vector<8x8xi32>
    %51 = arith.sitofp %50 : vector<8x8xi32> to vector<8x8xf32>
    %52 = arith.mulf %46, %51 : vector<8x8xf32>
    %cst_27 = arith.constant dense<0.000000e+00> : vector<8xf32>
    %53 = vector.multi_reduction <add>, %52, %cst_27 [0] : vector<8x8xf32> to vector<8xf32>
    %54 = vector.shape_cast %53 : vector<8xf32> to vector<1x8xf32>
    %c0_28 = arith.constant 0 : index
    %c0_29 = arith.constant 0 : index
    %55 = vector.load %arg9[%c0_28, %c0_29] : memref<1x8xf32, #tpu.memory_space<vmem>>, vector<1x8xf32>
    tpu.vector_store %arg9[%c0_28, %c0_29], %54 {strides = array<i32>} : memref<1x8xf32, #tpu.memory_space<vmem>>, vector<1x8xf32>,
    return
  }
}

</mosaic_0001>

<bundles_post_ra>
// kernel: model_forward.1
= control target key start
LH: loop header
LB: loop body
LE: loop exit
PB: predicated region body
PF: predicated region fallthrough
CT: control target
= control target key end

     0   :  { %14 = vsyncpa [#allocation3], 0  ;;  %s1410_s0 = inlined_call_operand.vmem [shape: s32[16,1], index: 0, kind: input, shape index: {}]   ;;  %s1411_s1 = inlined_call_operand.vmem [shape: s32[16,1], index: 1, kind: input, shape index: {}]   ;;  %s1412_s2 = inlined_call_operand.hbm [shape: f32[16,32], index: 2, kind: input, shape index: {}]   ;;  %s1413_s3 = inlined_call_operand.vmem [shape: f32[32,32], index: 3, kind: input, shape index: {}]   ;;  %s1414_s4 = inlined_call_operand.hbm [shape: f32[32,32], index: 4, kind: input, shape index: {}]   ;;  %s1415_s5 = inlined_call_operand.vmem [shape: f32[1,32], index: 5, kind: input, shape index: {}]   ;;  %s1416_s6 = inlined_call_operand.hbm [shape: f32[32,32], index: 6, kind: input, shape index: {}]   ;;  %s1417_s7 = inlined_call_operand.hbm [shape: f32[32,32], index: 7, kind: input, shape index: {}]   ;;  %s1418_s8 = inlined_call_operand.vmem [shape: f32[1,32], index: 8, kind: input, shape index: {}]   ;;  %s1419_s9 = inlined_call_operand.hbm [shape: f32[1,8], index: 9, kind: output, shape index: {}]  }
   0x1   :  { %15 = vsyncpa [#allocation6], 0 }
   0x2   :  { %16 = vsyncpa [#allocation9], 0 }
   0x3   :  { %17 = vsyncpa [#allocation4], 0  ;;  %s1200_s30 = smov [#allocation5]   ;;  %s1201_s11 = smov [#allocation2]  }
   0x4   :  { %s41_s10 = sshll.u32 %s1200_s30, 4  ;;  %s27_s12 = sshll.u32 %s1201_s11, 4  ;;  %s42_s10 = int_to_ptr.vmem [resolvable:$true] %s41_s10  ;;  %s28_s12 = int_to_ptr.vmem [resolvable:$true] %s27_s12 }
   0x5   :  { %s1100_s13 = scalar_lea.vmem %s42_s10, 512  ;;  %p1105_p1 = scmp.lt.s32.totalorder %s42_s10, %s42_s10 }
   0x6   :  { %p1101_p0 = scmp.ne.s32.totalorder %s42_s10, %s1100_s13  ;;  %p1106_p2 = scmp.lt.s32.totalorder %s1100_s13, %s1100_s13 }
   0x8   :  { %p1107_p3 = por %p1106_p2, %p1105_p1 }
   0xa   :  { %p1108_p4 = pnand %p1107_p3, %p1101_p0 }
   0xc   :  { %1111 = shalt.err (!%p1108_p4)
}
   0xd   :  { %s1202_s14 = smov 128   ;;  %s1203_s15 = smov 8  }
   0xe   :  { %47 = dma.hbm_to_vmem [thread:$0]  %s1414_s4, 512, %s42_s10, [#allocation6], %s1202_s14, %s1202_s14, %s1203_s15  }
   0xf   :  { %s1120_s18 = scalar_lea.vmem %s28_s12, 256  ;;  %p1125_p6 = scmp.lt.s32.totalorder %s28_s12, %s28_s12 }
  0x10   :  { %p1121_p5 = scmp.ne.s32.totalorder %s28_s12, %s1120_s18  ;;  %p1126_p7 = scmp.lt.s32.totalorder %s1120_s18, %s1120_s18 }
  0x12   :  { %p1127_p8 = por %p1126_p7, %p1125_p6 }
  0x14   :  { %p1128_p9 = pnand %p1127_p8, %p1121_p5 }
  0x16   :  { %1131 = shalt.err (!%p1128_p9)
}
  0x17   :  { %33 = dma.hbm_to_vmem [thread:$0]  %s1412_s2, 256, %s28_s12, [#allocation3], %s1202_s14, %s1202_s14, %s1203_s15  }
  0x18   :  { %s1204_s21 = smov [#allocation7]   ;;  %s1205_s23 = smov [#allocation8]  }
  0x19   :  { %s55_s22 = sshll.u32 %s1204_s21, 4  ;;  %s67_s24 = sshll.u32 %s1205_s23, 4  ;;  %s56_s22 = int_to_ptr.vmem [resolvable:$true] %s55_s22  ;;  %s68_s24 = int_to_ptr.vmem [resolvable:$true] %s67_s24 }
  0x1a   :  { %s1140_s4 = scalar_lea.vmem %s56_s22, 512  ;;  %p1145_p11 = scmp.lt.s32.totalorder %s56_s22, %s56_s22 }
  0x1b   :  { %p1141_p10 = scmp.ne.s32.totalorder %s56_s22, %s1140_s4  ;;  %p1146_p12 = scmp.lt.s32.totalorder %s1140_s4, %s1140_s4 }
  0x1d   :  { %p1147_p13 = por %p1146_p12, %p1145_p11 }
  0x1f   :  { %p1148_p0 = pnand %p1147_p13, %p1141_p10 }
  0x21   :  { %1151 = shalt.err (!%p1148_p0)
}
  0x22   :  { %61 = dma.hbm_to_vmem [thread:$0]  %s1416_s6, 512, %s56_s22, [#allocation6], %s1202_s14, %s1202_s14, %s1203_s15  }
  0x23   :  { %s1160_s2 = scalar_lea.vmem %s68_s24, 512  ;;  %p1165_p2 = scmp.lt.s32.totalorder %s68_s24, %s68_s24 }
  0x24   :  { %p1161_p1 = scmp.ne.s32.totalorder %s68_s24, %s1160_s2  ;;  %p1166_p3 = scmp.lt.s32.totalorder %s1160_s2, %s1160_s2 }
  0x26   :  { %p1167_p4 = por %p1166_p3, %p1165_p2 }
  0x28   :  { %p1168_p5 = pnand %p1167_p4, %p1161_p1 }
  0x2a   :  { %1171 = shalt.err (!%p1168_p5)
}
  0x2b   :  { %73 = dma.hbm_to_vmem [thread:$0]  %s1417_s7, 512, %s68_s24, [#allocation9], %s1202_s14, %s1202_s14, %s1203_s15  }
  0x2c   :  { %1192 = dma.done.wait [#allocation3], 256  }
  0x2d   :  { %1193 = vsyncadd [#allocation3], 4294967040 }
  0x2e   :  { %1194 = dma.done.wait [#allocation6], 1024  }
  0x2f   :  { %1195 = vsyncadd [#allocation6], 4294966272 }
  0x30   :  { %1196 = dma.done.wait [#allocation9], 512  }
  0x31   :  { %1197 = vsyncadd [#allocation9], 4294966784  ;;  %v1206_v0 = vmov 0   ;;  %v91_v1 = vld [vmem:[%s1411_s1 + $0x8] sm:$0xff]  ;;  %v229_v2 = vld [vmem:[%s1410_s0] sm:$0xff]  ;;  %v88_v7 = vlaneseq  ;;  %vm104_vm0 = vcmask 130048  }
  0x32   :  { %1088 = vset.pattern.permute.xlu0 %v1206_v0  ;;  %1089 = vset.pattern.permute.xlu1 %v1206_v0  ;;  %v90_v3 = vld [vmem:[%s1411_s1] sm:$0xff]  ;;  %v230_v4 = vld [vmem:[%s1410_s0 + $0x8] sm:$0xff]  ;;  %v1207_v10 = vmov 0.0   ;;  %v1208_v23 = vmov 1.0   ;;  %s1209_s0 = smov 32   ;;  %v331_v30 = vld [vmem:[#allocation5 + $0x8] sm:$0xff] }
  0x33   :  { %96 = vperm.xlu0 %1088, %v91_v1   ;;  %93 = vperm.xlu1 %1089, %v90_v3   ;;  %v244_v5 = vld [vmem:[#allocation2 + $0x8] sm:$0xff]  ;;  %v243_v6 = vld [vmem:[#allocation2] sm:$0xff]  ;;  %v1299_v8 = vand.u32 127, %v88_v7  ;;  %v330_v31 = vld [vmem:[#allocation5] sm:$0xff]  ;;  %vm147_vm5 = vcmask 64512   ;;  %vm424_vm6 = vcmask 261120  }
  0x34   :  { %1021 = vmatprep.subr.mxu1 %v244_v5  ;;  %v333_v28 = vld [vmem:[#allocation5 + $0x18] sm:$0xff]  ;;  %v332_v29 = vld [vmem:[#allocation5 + $0x10] sm:$0xff]  ;;  %v329_v36 = vld [vmem:[%s1413_s3 + $0x18] sm:$0xff]  ;;  %vm453_vm7 = vcmask 523264   ;;  %vm1210_vm8 = vmmov 0   ;;  %vm932_vm10 = vcmask 57344  }
  0x35   :  { %1022 = vmatpush3.msra.mxu1 %v244_v5  ;;  %v328_v39 = vld [vmem:[%s1413_s3 + $0x10] sm:$0xff]  ;;  %v327_v42 = vld [vmem:[%s1413_s3 + $0x8] sm:$0xff]  ;;  %v326_v45 = vld [vmem:[%s1413_s3] sm:$0xff] }
  0x36   :  { %1023 = vmatprep.subr.mxu1 %v243_v6  ;;  %v556_v50 = vld [vmem:[#allocation8 + $0x18] sm:$0xff]  ;;  %v555_v51 = vld [vmem:[#allocation8 + $0x10] sm:$0xff]  ;;  %v553_v59 = vld [vmem:[#allocation8] sm:$0xff] }
  0x37   :  { %232 = vperm.xlu0 %1088, %v229_v2   ;;  %235 = vperm.xlu1 %1089, %v230_v4   ;;  %v554_v60 = vld [vmem:[#allocation8 + $0x8] sm:$0xff]  ;;  %v962_v61 = vld [vmem:[%s1415_s5] ss:$0 sm:$0xff]  ;;  %v552_v4 = vld [vmem:[#allocation7 + $0x18] sm:$0xff] }
  0x38   :  { %1024 = vmatpush3.msra.mxu1 %v243_v6  ;;  %v551_v6 = vld [vmem:[#allocation7 + $0x10] sm:$0xff] }
  0x3b   :  { %437 = vrot.lane.b32.xlu1 %v333_v28, %s1209_s0 }
  0x3f   :  { %435 = vrot.lane.b32.xlu1 %v332_v29, %s1209_s0 }
  0x43   :  { %433 = vrot.lane.b32.xlu1 %v331_v30, %s1209_s0 }
  0x47   :  { %431 = vrot.lane.b32.xlu1 %v330_v31, %s1209_s0 }
  0xae   :  { %v97_v9 = vpop.permute.xlu0 %96  ;;  %v1310_v22 = vpop.permute.xlu1 %93 }
  0xaf   :  { %vm99_vm1 = vcmp.eq.s32.totalorder %v1299_v8, %v97_v9  ;;  %vm98_vm3 = vcmp.eq.s32.totalorder %v1299_v8, %v1310_v22 }
  0xb0   :  { %v1303_v11 = vsel %vm99_vm1, 1.0, %v1207_v10  ;;  %1016 = vmatprep.subr.msk.mxu0 %vm98_vm3, %v1208_v23  ;;  %v951_v58 = vsel %vm98_vm3, 1.0, %v1207_v10 }
  0xb1   :  { %v105_v12 = vsel %vm104_vm0, %v1303_v11, 0.0  ;;  %1017 = vmatpush3.msk.msra.mxu0 %vm98_vm3, %v1208_v23 }
  0xb2   :  { %v106_v13 = vrot.slane %v105_v12, 4  ;;  %v233_v14 = vpop.permute.xlu0 %232  ;;  %v236_v24 = vpop.permute.xlu1 %235 }
  0xb3   :  { %vm237_vm2 = vcmp.eq.s32.totalorder %v1299_v8, %v233_v14  ;;  %vm238_vm4 = vcmp.eq.s32.totalorder %v1299_v8, %v236_v24  ;;  %v550_v14 = vld [vmem:[#allocation7 + $0x8] sm:$0xff] }
  0xb4   :  { %v107_v15 = vadd.f32 %v106_v13, %v105_v12  ;;  %v956_v16 = vsel %vm237_vm2, 1.0, %v1207_v10  ;;  %v957_v25 = vsel %vm238_vm4, 1.0, %v1207_v10 }
  0xb5   :  { %1025 = vmatprep.mubr.msk.f32.mxu1 %vm104_vm0, %v956_v16 }
  0xb6   :  { %v108_v17 = vrot.slane %v107_v15, 2  ;;  %1026 = vmatmul.mubr.msk.f32.vlgmr.msra.gmra.mxu1 %vm104_vm0, %v957_v25  ;;  %v438_v37 = vpop.permute.xlu1 %437 }
  0xb7   :  { %v446_v38 = vsel %vm424_vm6, %v329_v36, %v438_v37 }
  0xb8   :  { %v109_v18 = vadd.f32 %v108_v17, %v107_v15  ;;  %1035 = vmatprep.subr.msk.mxu1 %vm453_vm7, %v446_v38  ;;  %v549_v17 = vld [vmem:[#allocation7] sm:$0xff] }
  0xb9   :  { %1036 = vmatpush3.xpose.msk.msra.mxu1 %vm453_vm7, %v446_v38 }
  0xba   :  { %v110_v19 = vrot.slane %v109_v18, 1  ;;  %v436_v40 = vpop.permute.xlu1 %435 }
  0xbb   :  { %v445_v41 = vsel %vm424_vm6, %v328_v39, %v436_v40 }
  0xbc   :  { %v111_v20 = vadd.f32 %v110_v19, %v109_v18  ;;  %1037 = vmatprep.subr.msk.mxu1 %vm453_vm7, %v445_v41 }
  0xbd   :  { %1038 = vmatpush3.xpose.msk.msra.mxu1 %vm453_vm7, %v445_v41 }
  0xbe   :  { %v112_v21 = vmax.f32 %v111_v20, 1.0  ;;  %v434_v43 = vpop.permute.xlu1 %433 }
  0xbf   :  { %v444_v44 = vsel %vm424_vm6, %v327_v42, %v434_v43 }
  0xc0   :  { %1090 = vrcp.f32 %v112_v21  ;;  %1039 = vmatprep.subr.msk.mxu1 %vm453_vm7, %v444_v44 }
  0xc1   :  { %1040 = vmatpush3.xpose.msk.msra.mxu1 %vm453_vm7, %v444_v44 }
  0xc2   :  { %v432_v46 = vpop.permute.xlu1 %431 }
  0xc3   :  { %v443_v47 = vsel %vm424_vm6, %v326_v45, %v432_v46 }
  0xc4   :  { %1041 = vmatprep.subr.msk.mxu1 %vm453_vm7, %v443_v47 }
  0xc5   :  { %1042 = vmatpush3.xpose.msk.msra.mxu1 %vm453_vm7, %v443_v47 }
  0xcd   :  { %v1091_v26 = vpop.eup %1090 }
  0xce   :  { %v114_v27 = vmul.f32 %v1091_v26, %v1303_v11  ;;  %v971_v26 = vld [vmem:[%s1418_s8] ss:$0 sm:$0xff]  ;;  %s1211_s8 = smov [#allocation10]  }
  0xcf   :  { %s940_s23 = sshll.u32 %s1211_s8, 4  ;;  %s941_s23 = int_to_ptr.vmem [resolvable:$true] %s940_s23 }
  0xd0   :  { %115 = vxpose.xlu0.b32.start.end [1/1] (short) (narrow) %v114_v27, 16  ;;  %s1172_s24 = scalar_lea.vmem %s941_s23, 16  ;;  %s1176_s4 = scalar_lea.vmem %s941_s23, 32 }
  0xd1   :  { %p1173_p6 = scmp.ne.s32.totalorder %s941_s23, %s1172_s24  ;;  %p1177_p7 = scmp.lt.s32.totalorder %s941_s23, %s941_s23 }
  0xd2   :  { %p1178_p8 = scmp.lt.s32.totalorder %s1176_s4, %s1172_s24 }
  0xd4   :  { %p1179_p9 = por %p1178_p8, %p1177_p7 }
  0xd6   :  { %p1180_p10 = pnand %p1179_p9, %p1173_p6 }
  0xfd   :  { %649 = vrot.lane.b32.xlu0 %v554_v60, %s1209_s0 }
 0x14c   :  { %v131_v32 = vpop.trf.xlu0 }
 0x14d   :  { %1018 = vmatprep.mubr.msk.f32.mxu0 %vm147_vm5, %v131_v32 }
 0x150   :  { %v132_v33 = vpop.trf.xlu0 }
 0x151   :  { %1019 = vmatmul.mubr.msk.f32.vlgmr.msra.gmra.mxu0 %vm147_vm5, %v132_v33  ;;  %v920_v33 = vshrl.u32 %v88_v7, 7 }
 0x153   :  { %vm921_vm9 = vcmp.eq.s32.totalorder %v920_v33, %v1299_v8 }
 0x16f   :  { %v650_v15 = vpop.permute.xlu0 %649 }
 0x170   :  { %v660_v16 = vsel %vm424_vm6, %v550_v14, %v650_v15 }
 0x176   :  { %v1027_v34 = vpop.f32.mrf.mxu1 }
 0x177   :  { %1028 = vmatprep.subr.mxu0 %v1027_v34 }
 0x178   :  { %v317_v35 = vpop.f32.mrf.mxu1  ;;  %1029 = vmatpush3.msra.mxu0 %v1027_v34 }
 0x179   :  { %418 = vrot.lane.b32.xlu1 %v317_v35, %s1209_s0  ;;  %1030 = vmatprep.subr.mxu0 %v317_v35 }
 0x17a   :  { %1031 = vmatpush3.msra.mxu0 %v317_v35 }
 0x17d   :  { %420 = vrot.lane.b32.xlu1 %v1027_v34, %s1209_s0  ;;  %v982_v34 = vsel %vm921_vm9, 1.0, %v1207_v10 }
 0x181   :  { %653 = vrot.lane.b32.xlu1 %v556_v50, %s1209_s0 }
 0x185   :  { %651 = vrot.lane.b32.xlu1 %v555_v51, %s1209_s0 }
 0x189   :  { %647 = vrot.lane.b32.xlu1 %v553_v59, %s1209_s0 }
 0x1eb   :  { %v419_v52 = vpop.permute.xlu1 %418 }
 0x1ef   :  { %v421_v55 = vpop.permute.xlu1 %420 }
 0x1f3   :  { %v654_v0 = vpop.permute.xlu1 %653 }
 0x1f4   :  { %v662_v9 = vsel %vm424_vm6, %v552_v4, %v654_v0 }
 0x1f7   :  { %v652_v12 = vpop.permute.xlu1 %651 }
 0x1f8   :  { %v661_v13 = vsel %vm424_vm6, %v551_v6, %v652_v12 }
 0x1fb   :  { %v648_v18 = vpop.permute.xlu1 %647 }
 0x1fc   :  { %v659_v19 = vsel %vm424_vm6, %v549_v17, %v648_v18 }
 0x211   :  { %v1020_v48 = vpop.f32.mrf.mxu0 }
 0x213   :  { %v220_v49 = vpop.f32.mrf.mxu0 }
 0x214   :  { %1032 = vmatprep.mubr.msk.f32.mxu0 %vm104_vm0, %v220_v49 }
 0x215   :  { %1033 = vmatmul.mubr.msk.f32.vlgmr.msra.gmra.mxu0 %vm104_vm0, %v1020_v48 }
 0x216   :  { %1050 = vmatprep.mubr.msk.f32.mxu0 %vm104_vm0, %v220_v49 }
 0x2d5   :  { %v1034_v53 = vpop.f32.mrf.mxu0 }
 0x2d6   :  { %v426_v57 = vsel %vm424_vm6, %v1034_v53, %v421_v55 }
 0x2d7   :  { %v407_v54 = vpop.f32.mrf.mxu0 }
 0x2d8   :  { %v425_v56 = vsel %vm424_vm6, %v407_v54, %v419_v52 }
 0x2d9   :  { %1043 = vmatprep.mubr.msk.f32.mxu1 %vm453_vm7, %v425_v56 }
 0x2da   :  { %1044 = vmatmul.mubr.msk.f32.vlgmr.msra.gmra.mxu1 %vm453_vm7, %v426_v57 }
 0x2db   :  { %1068 = vmatprep.mubr.msk.f32.mxu1 %vm104_vm0, %v951_v58 }
 0x39a   :  { %v1045_v62 = vpop.f32.mrf.mxu1 }
 0x39b   :  { %v544_v63 = vadd.f32 %v1045_v62, %v962_v61 }
 0x39c   :  { %v538_v1 = vpop.f32.mrf.mxu1 }
 0x39d   :  { %v548_v2 = vmax.f32 %v544_v63, 0.0  ;;  %v539_v3 = vadd.f32 %v962_v61, %v538_v1 }
 0x39f   :  { %v547_v5 = vmax.f32 %v539_v3, 0.0  ;;  %1046 = vmatprep.subr.mxu0 %v548_v2 }
 0x3a0   :  { %1047 = vmatpush3.msra.mxu0 %v548_v2 }
 0x3a1   :  { %635 = vrot.lane.b32.xlu1 %v547_v5, %s1209_s0  ;;  %1048 = vmatprep.subr.mxu0 %v547_v5 }
 0x3a2   :  { %1049 = vmatpush3.msra.mxu0 %v547_v5 }
 0x3a3   :  { %1051 = vmatmul.mubr.msk.f32.vlgmr.msra.gmra.mxu0 %vm104_vm0, %v1020_v48  ;;  %1053 = vmatprep.subr.msk.mxu0 %vm453_vm7, %v662_v9 }
 0x3a4   :  { %1054 = vmatpush3.xpose.msk.msra.mxu0 %vm453_vm7, %v662_v9 }
 0x3a5   :  { %637 = vrot.lane.b32.xlu1 %v548_v2, %s1209_s0  ;;  %1055 = vmatprep.subr.msk.mxu0 %vm453_vm7, %v661_v13 }
 0x3a8   :  { %1056 = vmatpush3.xpose.msk.msra.mxu0 %vm453_vm7, %v661_v13 }
 0x3a9   :  { %1057 = vmatprep.subr.msk.mxu0 %vm453_vm7, %v660_v16 }
 0x3ac   :  { %1058 = vmatpush3.xpose.msk.msra.mxu0 %vm453_vm7, %v660_v16 }
 0x3ad   :  { %1059 = vmatprep.subr.msk.mxu0 %vm453_vm7, %v659_v19 }
 0x3b0   :  { %1060 = vmatpush3.xpose.msk.msra.mxu0 %vm453_vm7, %v659_v19 }
 0x413   :  { %v636_v20 = vpop.permute.xlu1 %635 }
 0x417   :  { %v638_v23 = vpop.permute.xlu1 %637 }
 0x463   :  { %v1052_v21 = vpop.f32.mrf.mxu0 }
 0x464   :  { %v642_v25 = vsel %vm424_vm6, %v1052_v21, %v638_v23 }
 0x465   :  { %v624_v22 = vpop.f32.mrf.mxu0 }
 0x466   :  { %v641_v24 = vsel %vm424_vm6, %v624_v22, %v636_v20 }
 0x467   :  { %1061 = vmatprep.mubr.msk.f32.mxu0 %vm453_vm7, %v641_v24 }
 0x468   :  { %1062 = vmatmul.mubr.msk.f32.vlgmr.msra.gmra.mxu0 %vm453_vm7, %v642_v25 }
 0x528   :  { %v1063_v27 = vpop.f32.mrf.mxu0 }
 0x529   :  { %v759_v28 = vadd.f32 %v1063_v27, %v971_v26 }
 0x52a   :  { %v753_v29 = vpop.f32.mrf.mxu0 }
 0x52b   :  { %v754_v30 = vadd.f32 %v971_v26, %v753_v29  ;;  %1064 = vmatprep.subr.mxu1 %v759_v28 }
 0x52c   :  { %1065 = vmatpush3.msra.mxu1 %v759_v28 }
 0x52d   :  { %1066 = vmatprep.subr.mxu1 %v754_v30 }
 0x52e   :  { %1067 = vmatpush3.msra.mxu1 %v754_v30 }
 0x52f   :  { %1069 = vmatmul.mubr.msk.f32.vlgmr.msra.gmra.mxu1 %vm104_vm0, %v1303_v11  ;;  %1071 = vmatprep.subr.mxu1 %v1207_v10 }
 0x530   :  { %1073 = vmatprep.mubr.msk.f32.mxu1 %vm1210_vm8, %v1207_v10 }
 0x5ef   :  { %v1070_v31 = vpop.f32.mrf.mxu1 }
 0x5f0   :  { %1072 = vmatpush3.xpose.msk.msra.mxu1 %vm424_vm6, %v1070_v31 }
 0x5f1   :  { %v834_v32 = vpop.f32.mrf.mxu1 }
 0x5f3   :  { %1074 = vmatmul.mubr.msk.f32.vlgmr.msra.gmra.mxu1 %vm424_vm6, %v834_v32 }
 0x6b3   :  { %v915_v35 = vpop.f32.mrf.mxu1 }
 0x6b4   :  { %v924_v36 = vmul.f32 %v982_v34, %v915_v35 }
 0x6b5   :  { %v1075_v11 = vpop.f32.mrf.mxu1 }
 0x6b6   :  { %v925_v37 = vsel %vm147_vm5, %v924_v36, 0.0 }
 0x6b7   :  { %v926_v38 = vrot.slane %v925_v37, 4 }
 0x6b9   :  { %v927_v39 = vadd.f32 %v926_v38, %v925_v37 }
 0x6bb   :  { %v928_v40 = vrot.slane %v927_v39, 2 }
 0x6bd   :  { %v929_v41 = vadd.f32 %v928_v40, %v927_v39 }
 0x6bf   :  { %v930_v42 = vrot.slane %v929_v41, 1 }
 0x6c1   :  { %v931_v43 = vadd.f32 %v930_v42, %v929_v41 }
 0x6c3   :  { %933 = vst.msk [vmem:[#allocation10] sm:$0x1] %vm932_vm10, %v931_v43 }
 0x6c4   :  { %1183 = shalt.err (!%p1180_p10)
}
 0x6c5   :  { %943 = dma.vmem_to_hbm [thread:$0]  %s941_s23, 16, %s1419_s9, [#allocation4]  }
 0x6c6   :  { %1198 = dma.done.wait [#allocation4], 16  }
 0x6c7   :  { %1199 = vsyncadd [#allocation4], 4294967280 }
 0x6c8   :  { %947 = vsyncpa [#allocation3], 1 }
 0x6c9   :  { %948 = vsyncpa [#allocation6], 1 }
 0x6ca   :  { %949 = vsyncpa [#allocation9], 1 }
 0x6cb   :  { %950 = vsyncpa [#allocation4], 1 }

</bundles_post_ra>
